<compile_context>
chip_gen: v5e
topology: v5e:2x2
jax: 0.10.0
libtpu: 0.0.40
codegen_flags: <defaults>
</compile_context>

<pallas_src>
import functools

import jax
import jax.numpy as jnp
from jax.experimental import pallas as pl
from jax.experimental.pallas import tpu as pltpu


def _round_up(n: int, m: int) -> int:
    return (n + m - 1) // m * m


def _act_dtype_for_device():
    """bf16 EUP/VPU exists on v6e / v7x; fall back to f32 elsewhere (v4/v5)."""
    try:
        kind = jax.devices()[0].device_kind.lower()
    except Exception:
        return jnp.float32
    if ("v6" in kind) or ("v7" in kind):
        return jnp.bfloat16
    return jnp.float32


def _lstm_disc_kernel(x_ref, wih_ref, bg_ref, w1_ref, b1_ref, w2_ref, b2_ref,
                      o_ref, *, act_dtype):
    """Fused discriminator forward for one batch tile."""
    hp = w1_ref.shape[0]  # padded hidden dim (multiple of 128)

    # ---- LSTM cell (single step, zero init state; forget gate not computed) ----
    x = x_ref[...].astype(wih_ref.dtype)                       # f32 -> bf16 (VPU)
    gates = jnp.dot(x, wih_ref[...],
                    preferred_element_type=jnp.float32)        # (bt, 3*hp) f32
    gates = gates + bg_ref[...]                                # packed b_ih + b_hh

    i_g = gates[:, 0 * hp:1 * hp].astype(act_dtype)            # input gate
    g_g = gates[:, 1 * hp:2 * hp].astype(act_dtype)            # cell gate
    o_g = gates[:, 2 * hp:3 * hp].astype(act_dtype)            # output gate

    half = jnp.asarray(0.5, act_dtype)
    one = jnp.asarray(1.0, act_dtype)
    # sigmoid(x) = 0.5*(tanh(0.5*x)+1): single EUP push; mul/add ride VPU slack.
    sig_i = half * (jnp.tanh(half * i_g) + one)
    sig_o = half * (jnp.tanh(half * o_g) + one)
    c = sig_i * jnp.tanh(g_g)
    h = sig_o * jnp.tanh(c)                                    # (bt, hp)

    # ---- Linear(H -> I) + LeakyReLU(0.1) --------------------------------------
    h1 = jnp.dot(h.astype(w1_ref.dtype), w1_ref[...],
                 preferred_element_type=jnp.float32)           # (bt, ip) f32
    h1 = h1 + b1_ref[...]
    h1 = jnp.maximum(h1, 0.1 * h1)                             # LeakyReLU(0.1)

    # ---- Linear(I -> 1) + Sigmoid: VPU multiply + XLU lane reduction ----------
    logit = jnp.sum(h1 * w2_ref[...], axis=-1, keepdims=True) + b2_ref[0, 0]
    o_ref[...] = 0.5 * (jnp.tanh(0.5 * logit) + 1.0)           # (bt, 1) f32


def lstm_discriminator_forward(x, W_ih, b_ih, W_hh, b_hh, W1, b1, W2, b2,
                               *, block_b: int = 2048):
    """Pallas forward of LSTMDiscriminator. Returns (B, 1) float32 probabilities."""
    del W_hh  # unused: seq_len == 1 and h0 == 0, so h0 @ W_hh^T == 0
    B, ts_dim = x.shape
    H = W_ih.shape[0] // 4
    I = W1.shape[0]

    h_pad = _round_up(H, 128)
    i_pad = _round_up(I, 128)

    f32 = jnp.float32
    bf16 = jnp.bfloat16

    # Pack W_ih^T into (ts_dim, 3*h_pad): lane-aligned slabs for gates (i, g, o);
    # forget gate dropped (dead work since c0 == 0). Fold b_ih + b_hh likewise.
    wih_t = jnp.zeros((ts_dim, 3 * h_pad), f32)
    b_gate = jnp.zeros((1, 3 * h_pad), f32)
    b_sum = (b_ih + b_hh).astype(f32)
    for dst, src in enumerate((0, 2, 3)):  # PyTorch order i, f, g, o -> keep i, g, o
        wih_t = wih_t.at[:, dst * h_pad:dst * h_pad + H].set(
            W_ih[src * H:(src + 1) * H, :].astype(f32).T)
        b_gate = b_gate.at[0, dst * h_pad:dst * h_pad + H].set(
            b_sum[src * H:(src + 1) * H])

    w1_t = jnp.zeros((h_pad, i_pad), f32).at[:H, :I].set(W1.astype(f32).T)
    b1_p = jnp.zeros((1, i_pad), f32).at[0, :I].set(b1.astype(f32))
    w2_p = jnp.zeros((1, i_pad), f32).at[0, :I].set(W2.astype(f32).reshape(-1))
    b2_p = b2.astype(f32).reshape(1, 1)

    # Batch tiling: sublane-aligned tile, partial last tile handled by Pallas
    # masking (no wrapper pad/cast pass over x). Cap bt so there are >=2 grid
    # tiles when possible (lets "parallel" shard across v7x's 2 TensorCores).
    b8 = _round_up(B, 8)
    bt = min(block_b, b8)
    if b8 > 8:
        bt = min(bt, _round_up(pl.cdiv(b8, 2), 8))
    grid_b = pl.cdiv(B, bt)

    act_dtype = _act_dtype_for_device()
    kernel = functools.partial(_lstm_disc_kernel, act_dtype=act_dtype)

    grid_spec = pltpu.PrefetchScalarGridSpec(
        num_scalar_prefetch=0,
        grid=(grid_b,),
        in_specs=[
            pl.BlockSpec((bt, ts_dim), lambda b: (b, 0)),          # x tile (streams)
            pl.BlockSpec((ts_dim, 3 * h_pad), lambda b: (0, 0)),   # W_ih^T  (resident)
            pl.BlockSpec((1, 3 * h_pad), lambda b: (0, 0)),        # packed gate bias
            pl.BlockSpec((h_pad, i_pad), lambda b: (0, 0)),        # W1^T    (resident)
            pl.BlockSpec((1, i_pad), lambda b: (0, 0)),            # b1
            pl.BlockSpec((1, i_pad), lambda b: (0, 0)),            # w2 row
            pl.BlockSpec(memory_space=pltpu.MemorySpace.SMEM),     # b2 scalar
        ],
        out_specs=pl.BlockSpec((bt, 1), lambda b: (b, 0)),         # compact (B,1) out
    )

    out = pl.pallas_call(
        kernel,
        out_shape=jax.ShapeDtypeStruct((B, 1), f32),
        grid_spec=grid_spec,
        compiler_params=pltpu.CompilerParams(
            dimension_semantics=("parallel",),  # batch tiles shard across TCs on v7x
        ),
    )(x.astype(f32), wih_t.astype(bf16), b_gate, w1_t.astype(bf16), b1_p, w2_p, b2_p)

    return out  # (B, 1) float32


def _reference(x, W_ih, b_ih, W_hh, b_hh, W1, b1, W2, b2):
    """Pure-JAX f32 reference matching the PyTorch module."""
    del W_hh
    gates = x @ W_ih.T + b_ih + b_hh
    i_g, _f_g, g_g, o_g = jnp.split(gates, 4, axis=1)
    c = jax.nn.sigmoid(i_g) * jnp.tanh(g_g)
    h = jax.nn.sigmoid(o_g) * jnp.tanh(c)
    h1 = h @ W1.T + b1
    h1 = jnp.where(h1 > 0, h1, 0.1 * h1)
    return jax.nn.sigmoid(h1 @ W2.T + b2)


if __name__ == "__main__":
    # Small shapes consistent with the module (batch=4, ts_dim=96, hidden=64, inter=32).
    B, ts_dim, hidden_dim, inter_dim = 4, 96, 64, 32

    key = jax.random.PRNGKey(0)
    ks = jax.random.split(key, 9)
    k_lstm = 1.0 / jnp.sqrt(hidden_dim)
    k_l1 = 1.0 / jnp.sqrt(hidden_dim)
    k_l2 = 1.0 / jnp.sqrt(inter_dim)

    x = jax.random.normal(ks[0], (B, ts_dim), jnp.float32)
    W_ih = jax.random.uniform(ks[1], (4 * hidden_dim, ts_dim), jnp.float32, -k_lstm, k_lstm)
    W_hh = jax.random.uniform(ks[2], (4 * hidden_dim, hidden_dim), jnp.float32, -k_lstm, k_lstm)
    b_ih = jax.random.uniform(ks[3], (4 * hidden_dim,), jnp.float32, -k_lstm, k_lstm)
    b_hh = jax.random.uniform(ks[4], (4 * hidden_dim,), jnp.float32, -k_lstm, k_lstm)
    W1 = jax.random.uniform(ks[5], (inter_dim, hidden_dim), jnp.float32, -k_l1, k_l1)
    b1 = jax.random.uniform(ks[6], (inter_dim,), jnp.float32, -k_l1, k_l1)
    W2 = jax.random.uniform(ks[7], (1, inter_dim), jnp.float32, -k_l2, k_l2)
    b2 = jax.random.uniform(ks[8], (1,), jnp.float32, -k_l2, k_l2)

    out = lstm_discriminator_forward(x, W_ih, b_ih, W_hh, b_hh, W1, b1, W2, b2)
    out = jax.block_until_ready(out)

    ref = _reference(x, W_ih, b_ih, W_hh, b_hh, W1, b1, W2, b2)
    max_err = float(jnp.max(jnp.abs(out - ref)))
    assert out.shape == (B, 1), out.shape
    assert max_err < 2e-2, f"max abs error vs f32 reference: {max_err}"
    print("KERNEL_OK")
</pallas_src>

<mosaic_0001>
module attributes {stable_mosaic.version = 11 : i64} {
  func.func @_lstm_disc_kernel(%arg0: i32, %arg1: memref<8x96xf32, #tpu.memory_space<vmem>>, %arg2: memref<96x384xbf16, #tpu.memory_space<vmem>>, %arg3: memref<1x384xf32, #tpu.memory_space<vmem>>, %arg4: memref<128x128xbf16, #tpu.memory_space<vmem>>, %arg5: memref<1x128xf32, #tpu.memory_space<vmem>>, %arg6: memref<1x128xf32, #tpu.memory_space<vmem>>, %arg7: memref<1x1xf32, #tpu.memory_space<smem>>, %arg8: memref<8x1xf32, #tpu.memory_space<vmem>>) attributes {dimension_semantics = [#tpu.dimension_semantics<parallel>], iteration_bounds = array<i64: 1>, scalar_prefetch = 0 : i64, scratch_operands = 0 : i64, tpu.core_type = #tpu.core_type<tc>, window_params = [{transform_indices = @transform_0, window_bounds = array<i64: 8, 96>}, {pipeline_mode = #tpu.pipeline_mode<synchronous>, transform_indices = @transform_1, window_bounds = array<i64: 96, 384>}, {pipeline_mode = #tpu.pipeline_mode<synchronous>, transform_indices = @transform_2, window_bounds = array<i64: 1, 384>}, {pipeline_mode = #tpu.pipeline_mode<synchronous>, transform_indices = @transform_3, window_bounds = array<i64: 128, 128>}, {pipeline_mode = #tpu.pipeline_mode<synchronous>, transform_indices = @transform_4, window_bounds = array<i64: 1, 128>}, {pipeline_mode = #tpu.pipeline_mode<synchronous>, transform_indices = @transform_5, window_bounds = array<i64: 1, 128>}, {transform_indices = @transform_6, window_bounds = array<i64: 1, 1>}, {transform_indices = @transform_7, window_bounds = array<i64: 8, 1>}]} {
    %c0 = arith.constant 0 : index
    %c0_0 = arith.constant 0 : index
    %0 = vector.load %arg1[%c0, %c0_0] : memref<8x96xf32, #tpu.memory_space<vmem>>, vector<8x96xf32>
    %1 = arith.truncf %0 : vector<8x96xf32> to vector<8x96xbf16>
    %c0_1 = arith.constant 0 : index
    %c0_2 = arith.constant 0 : index
    %2 = vector.load %arg2[%c0_1, %c0_2] : memref<96x384xbf16, #tpu.memory_space<vmem>>, vector<96x384xbf16>
    %cst = arith.constant dense<0.000000e+00> : vector<8x384xf32>
    %3 = tpu.matmul %1, %2, %cst {dimension_numbers = #tpu.dot_dimension_numbers<[1], [0], [0], [1], [0, 0, 1, 1], [], []>} : vector<8x96xbf16>, vector<96x384xbf16>, vector<8x384xf32> -> vector<8x384xf32>
    %c0_3 = arith.constant 0 : index
    %c0_4 = arith.constant 0 : index
    %4 = vector.load %arg3[%c0_3, %c0_4] : memref<1x384xf32, #tpu.memory_space<vmem>>, vector<1x384xf32>
    %5 = vector.broadcast %4 : vector<1x384xf32> to vector<8x384xf32>
    %6 = arith.addf %3, %5 : vector<8x384xf32>
    %7 = vector.extract_strided_slice %6 {offsets = [0, 0], sizes = [8, 128], strides = [1, 1]} : vector<8x384xf32> to vector<8x128xf32>
    %8 = vector.extract_strided_slice %6 {offsets = [0, 128], sizes = [8, 128], strides = [1, 1]} : vector<8x384xf32> to vector<8x128xf32>
    %9 = vector.extract_strided_slice %6 {offsets = [0, 256], sizes = [8, 128], strides = [1, 1]} : vector<8x384xf32> to vector<8x128xf32>
    %cst_5 = arith.constant 5.000000e-01 : f32
    %10 = vector.broadcast %cst_5 : f32 to vector<8x128xf32>
    %11 = arith.mulf %10, %7 : vector<8x128xf32>
    %12 = math.tanh %11 : vector<8x128xf32>
    %cst_6 = arith.constant 1.000000e+00 : f32
    %13 = vector.broadcast %cst_6 : f32 to vector<8x128xf32>
    %14 = arith.addf %12, %13 : vector<8x128xf32>
    %cst_7 = arith.constant 5.000000e-01 : f32
    %15 = vector.broadcast %cst_7 : f32 to vector<8x128xf32>
    %16 = arith.mulf %15, %14 : vector<8x128xf32>
    %cst_8 = arith.constant 5.000000e-01 : f32
    %17 = vector.broadcast %cst_8 : f32 to vector<8x128xf32>
    %18 = arith.mulf %17, %9 : vector<8x128xf32>
    %19 = math.tanh %18 : vector<8x128xf32>
    %cst_9 = arith.constant 1.000000e+00 : f32
    %20 = vector.broadcast %cst_9 : f32 to vector<8x128xf32>
    %21 = arith.addf %19, %20 : vector<8x128xf32>
    %cst_10 = arith.constant 5.000000e-01 : f32
    %22 = vector.broadcast %cst_10 : f32 to vector<8x128xf32>
    %23 = arith.mulf %22, %21 : vector<8x128xf32>
    %24 = math.tanh %8 : vector<8x128xf32>
    %25 = arith.mulf %16, %24 : vector<8x128xf32>
    %26 = math.tanh %25 : vector<8x128xf32>
    %27 = arith.mulf %23, %26 : vector<8x128xf32>
    %28 = arith.truncf %27 : vector<8x128xf32> to vector<8x128xbf16>
    %c0_11 = arith.constant 0 : index
    %c0_12 = arith.constant 0 : index
    %29 = vector.load %arg4[%c0_11, %c0_12] : memref<128x128xbf16, #tpu.memory_space<vmem>>, vector<128x128xbf16>
    %cst_13 = arith.constant dense<0.000000e+00> : vector<8x128xf32>
    %30 = tpu.matmul %28, %29, %cst_13 {dimension_numbers = #tpu.dot_dimension_numbers<[1], [0], [0], [1], [0, 0, 1, 1], [], []>} : vector<8x128xbf16>, vector<128x128xbf16>, vector<8x128xf32> -> vector<8x128xf32>
    %c0_14 = arith.constant 0 : index
    %c0_15 = arith.constant 0 : index
    %31 = vector.load %arg5[%c0_14, %c0_15] : memref<1x128xf32, #tpu.memory_space<vmem>>, vector<1x128xf32>
    %32 = vector.broadcast %31 : vector<1x128xf32> to vector<8x128xf32>
    %33 = arith.addf %30, %32 : vector<8x128xf32>
    %cst_16 = arith.constant 1.000000e-01 : f32
    %34 = vector.broadcast %cst_16 : f32 to vector<8x128xf32>
    %35 = arith.mulf %34, %33 : vector<8x128xf32>
    %36 = arith.maximumf %33, %35 : vector<8x128xf32>
    %c0_17 = arith.constant 0 : index
    %c0_18 = arith.constant 0 : index
    %37 = vector.load %arg6[%c0_17, %c0_18] : memref<1x128xf32, #tpu.memory_space<vmem>>, vector<1x128xf32>
    %38 = vector.broadcast %37 : vector<1x128xf32> to vector<8x128xf32>
    %39 = arith.mulf %36, %38 : vector<8x128xf32>
    %cst_19 = arith.constant dense<0.000000e+00> : vector<8xf32>
    %40 = vector.multi_reduction <add>, %39, %cst_19 [1] : vector<8x128xf32> to vector<8xf32>
    %41 = vector.shape_cast %40 : vector<8xf32> to vector<8x1xf32>
    %c0_20 = arith.constant 0 : index
    %c0_21 = arith.constant 0 : index
    %42 = memref.load %arg7[%c0_20, %c0_21] : memref<1x1xf32, #tpu.memory_space<smem>>
    %43 = vector.broadcast %42 : f32 to vector<8x1xf32>
    %44 = arith.addf %41, %43 : vector<8x1xf32>
    %cst_22 = arith.constant 5.000000e-01 : f32
    %45 = vector.broadcast %cst_22 : f32 to vector<8x1xf32>
    %46 = arith.mulf %45, %44 : vector<8x1xf32>
    %47 = math.tanh %46 : vector<8x1xf32>
    %cst_23 = arith.constant 1.000000e+00 : f32
    %48 = vector.broadcast %cst_23 : f32 to vector<8x1xf32>
    %49 = arith.addf %47, %48 : vector<8x1xf32>
    %cst_24 = arith.constant 5.000000e-01 : f32
    %50 = vector.broadcast %cst_24 : f32 to vector<8x1xf32>
    %51 = arith.mulf %50, %49 : vector<8x1xf32>
    %c0_25 = arith.constant 0 : index
    %c0_26 = arith.constant 0 : index
    %52 = vector.load %arg8[%c0_25, %c0_26] : memref<8x1xf32, #tpu.memory_space<vmem>>, vector<8x1xf32>
    tpu.vector_store %arg8[%c0_25, %c0_26], %51 {strides = array<i32>} : memref<8x1xf32, #tpu.memory_space<vmem>>, vector<8x1xf32>,
    return
  }
  func.func @transform_0(%arg0: i32) -> (i32, i32) {
    %c0_i32 = arith.constant 0 : i32
    %c0_i32_0 = arith.constant 0 : i32
    return %arg0, %c0_i32 : i32, i32
  }
  func.func @transform_1(%arg0: i32) -> (i32, i32) {
    %c0_i32 = arith.constant 0 : i32
    %c0_i32_0 = arith.constant 0 : i32
    %c0_i32_1 = arith.constant 0 : i32
    return %c0_i32, %c0_i32_0 : i32, i32
  }
  func.func @transform_2(%arg0: i32) -> (i32, i32) {
    %c0_i32 = arith.constant 0 : i32
    %c0_i32_0 = arith.constant 0 : i32
    %c0_i32_1 = arith.constant 0 : i32
    return %c0_i32, %c0_i32_0 : i32, i32
  }
  func.func @transform_3(%arg0: i32) -> (i32, i32) {
    %c0_i32 = arith.constant 0 : i32
    %c0_i32_0 = arith.constant 0 : i32
    %c0_i32_1 = arith.constant 0 : i32
    return %c0_i32, %c0_i32_0 : i32, i32
  }
  func.func @transform_4(%arg0: i32) -> (i32, i32) {
    %c0_i32 = arith.constant 0 : i32
    %c0_i32_0 = arith.constant 0 : i32
    %c0_i32_1 = arith.constant 0 : i32
    return %c0_i32, %c0_i32_0 : i32, i32
  }
  func.func @transform_5(%arg0: i32) -> (i32, i32) {
    %c0_i32 = arith.constant 0 : i32
    %c0_i32_0 = arith.constant 0 : i32
    %c0_i32_1 = arith.constant 0 : i32
    return %c0_i32, %c0_i32_0 : i32, i32
  }
  func.func @transform_6(%arg0: i32) -> (i32, i32) {
    %c0_i32 = arith.constant 0 : i32
    %c0_i32_0 = arith.constant 0 : i32
    %c0_i32_1 = arith.constant 0 : i32
    return %c0_i32, %c0_i32_0 : i32, i32
  }
  func.func @transform_7(%arg0: i32) -> (i32, i32) {
    %c0_i32 = arith.constant 0 : i32
    %c0_i32_0 = arith.constant 0 : i32
    return %arg0, %c0_i32 : i32, i32
  }
}

</mosaic_0001>

<bundles_post_ra>
// kernel: tpu_custom_call.1
= control target key start
LH: loop header
LB: loop body
LE: loop exit
PB: predicated region body
PF: predicated region fallthrough
CT: control target
= control target key end

     0   :  { %13 = vsyncpa [#allocation4], 0  ;;  %s702_s0 = inlined_call_operand.hbm [shape: f32[4,96], index: 0, kind: input, shape index: {}]   ;;  %s703_s1 = inlined_call_operand.hbm [shape: bf16[96,384], index: 1, kind: input, shape index: {}]   ;;  %s704_s2 = inlined_call_operand.vmem [shape: f32[1,384], index: 2, kind: input, shape index: {}]   ;;  %s705_s3 = inlined_call_operand.hbm [shape: bf16[128,128], index: 3, kind: input, shape index: {}]   ;;  %s706_s4 = inlined_call_operand.vmem [shape: f32[1,128], index: 4, kind: input, shape index: {}]   ;;  %s707_s5 = inlined_call_operand.vmem [shape: f32[1,128], index: 5, kind: input, shape index: {}]   ;;  %s708_s6 = inlined_call_operand.<no memory space> [shape: f32[1,1], index: 6, kind: input, shape index: {}]   ;;  %s709_s7 = inlined_call_operand.vmem [shape: f32[4,1], index: 7, kind: output, shape index: {}]  }
   0x1   :  { %14 = vsyncpa [#allocation6], 0  ;;  %s32_s26 = sshll.u32 %s703_s1, 4  ;;  %s33_s26 = int_to_ptr.hbm [resolvable:$true] %s32_s26 }
   0x2   :  { %18 = vsyncadd [#allocation4], 64  ;;  %s631_s27 = smov [#allocation5]   ;;  %s19_s8 = sshll.u32 %s702_s0, 4  ;;  %s20_s8 = int_to_ptr.hbm [resolvable:$true] %s19_s8 }
   0x3   :  { %s34_s28 = sshll.u32 %s631_s27, 4  ;;  %s632_s9 = smov 192   ;;  %s35_s28 = int_to_ptr.vmem [resolvable:$true] %s34_s28 }
   0x4   :  { %s633_s10 = smov 12   ;;  %s634_s11 = smov [#allocation3]  }
   0x5   :  { %40 = dma.hbm_to_vmem [thread:$0]  %s33_s26, 2304, %s35_s28, [#allocation6], %s632_s9, %s632_s9, %s633_s10  }
   0x6   :  { %s21_s12 = sshll.u32 %s634_s11, 4  ;;  %s635_s13 = smov 64   ;;  %s22_s12 = int_to_ptr.vmem [resolvable:$true] %s21_s12 }
   0x7   :  { %s636_s14 = smov 4   ;;  %s47_s16 = sshll.u32 %s705_s3, 4  ;;  %s48_s16 = int_to_ptr.hbm [resolvable:$true] %s47_s16 }
   0x8   :  { %27 = dma.hbm_to_vmem [thread:$0]  %s20_s8, 64, %s22_s12, [#allocation4], %s635_s13, %s635_s13, %s636_s14  }
   0x9   :  { %s637_s17 = smov [#allocation7]  }
   0xa   :  { %s49_s18 = sshll.u32 %s637_s17, 4  ;;  %s50_s18 = int_to_ptr.vmem [resolvable:$true] %s49_s18 }
   0xb   :  { %55 = dma.hbm_to_vmem [thread:$0]  %s48_s16, 1024, %s50_s18, [#allocation6], %s635_s13, %s635_s13, %s636_s14  }
   0xc   :  { %627 = dma.done.wait [#allocation4], 128  }
   0xd   :  { %628 = vsyncadd [#allocation4], 4294967168 }
   0xe   :  { %629 = dma.done.wait [#allocation6], 3328  }
   0xf   :  { %630 = vsyncadd [#allocation6], 4294963968  ;;  %v465_v0 = vld [vmem:[#allocation5 + $0x78] sm:$0xf]  ;;  %v526_v1 = vld [vmem:[#allocation5 + $0x80] sm:$0xf0] }
  0x10   :  { %v525_v2 = vld [vmem:[#allocation5 + $0x7c] sm:$0xf]  ;;  %v466_v3 = vor.u32 %v526_v1, %v465_v0  ;;  %v467_v4 = vld [vmem:[#allocation5 + $0x84] sm:$0xf0]  ;;  %v473_v5 = vld [vmem:[#allocation5 + $0x80] sm:$0xf] }
  0x11   :  { %v527_v6 = vld [vmem:[#allocation5 + $0x88] sm:$0xf0]  ;;  %v470_v7 = vor.u32 %v525_v2, %v467_v4  ;;  %v453_v9 = vld [vmem:[#allocation5 + $0x60] sm:$0xf]  ;;  %v522_v11 = vld [vmem:[#allocation5 + $0x64] sm:$0xf] }
  0x12   :  { %v474_v8 = vor.u32 %v527_v6, %v473_v5  ;;  %v523_v10 = vld [vmem:[#allocation5 + $0x68] sm:$0xf0]  ;;  %211 = vmatpush.bf16.msra.mxu0 %v466_v3  ;;  %v455_v13 = vld [vmem:[#allocation5 + $0x6c] sm:$0xf0]  ;;  %v461_v14 = vld [vmem:[#allocation5 + $0x68] sm:$0xf] }
  0x13   :  { %v454_v12 = vor.u32 %v523_v10, %v453_v9  ;;  %v524_v15 = vld [vmem:[#allocation5 + $0x70] sm:$0xf0]  ;;  %224 = vmatpush.bf16.msra.mxu1 %v470_v7  ;;  %v458_v16 = vor.u32 %v522_v11, %v455_v13  ;;  %v441_v18 = vld [vmem:[#allocation5 + $0x48] sm:$0xf]  ;;  %v519_v20 = vld [vmem:[#allocation5 + $0x4c] sm:$0xf] }
  0x14   :  { %237 = vmatpush.bf16.msra.mxu2 %v474_v8  ;;  %v462_v17 = vor.u32 %v524_v15, %v461_v14  ;;  %v520_v19 = vld [vmem:[#allocation5 + $0x50] sm:$0xf0]  ;;  %v443_v21 = vld [vmem:[#allocation5 + $0x54] sm:$0xf0]  ;;  %v449_v22 = vld [vmem:[#allocation5 + $0x50] sm:$0xf] }
  0x15   :  { %v521_v23 = vld [vmem:[#allocation5 + $0x58] sm:$0xf0]  ;;  %v442_v24 = vor.u32 %v520_v19, %v441_v18  ;;  %v446_v25 = vor.u32 %v519_v20, %v443_v21  ;;  %v429_v27 = vld [vmem:[#allocation5 + $0x30] sm:$0xf]  ;;  %v516_v29 = vld [vmem:[#allocation5 + $0x34] sm:$0xf] }
  0x16   :  { %212 = vmatpush.bf16.msra.mxu0 %v454_v12  ;;  %v450_v26 = vor.u32 %v521_v23, %v449_v22  ;;  %v517_v28 = vld [vmem:[#allocation5 + $0x38] sm:$0xf0]  ;;  %v431_v30 = vld [vmem:[#allocation5 + $0x3c] sm:$0xf0]  ;;  %v437_v31 = vld [vmem:[#allocation5 + $0x38] sm:$0xf] }
  0x17   :  { %225 = vmatpush.bf16.msra.mxu1 %v458_v16  ;;  %v518_v32 = vld [vmem:[#allocation5 + $0x40] sm:$0xf0]  ;;  %v430_v33 = vor.u32 %v517_v28, %v429_v27  ;;  %v417_v34 = vld [vmem:[#allocation5 + $0x18] sm:$0xf]  ;;  %v513_v36 = vld [vmem:[#allocation5 + $0x1c] sm:$0xf]  ;;  %v434_v37 = vor.u32 %v516_v29, %v431_v30 }
  0x18   :  { %238 = vmatpush.bf16.msra.mxu2 %v462_v17  ;;  %v514_v35 = vld [vmem:[#allocation5 + $0x20] sm:$0xf0]  ;;  %v438_v38 = vor.u32 %v518_v32, %v437_v31  ;;  %v419_v39 = vld [vmem:[#allocation5 + $0x24] sm:$0xf0]  ;;  %v425_v40 = vld [vmem:[#allocation5 + $0x20] sm:$0xf] }
  0x19   :  { %v535_v41 = vld [vmem:[#allocation7 + $0x38] sm:$0xff]  ;;  %v418_v43 = vor.u32 %v514_v35, %v417_v34  ;;  %v422_v44 = vor.u32 %v513_v36, %v419_v39  ;;  %v405_v46 = vld [vmem:[#allocation5] sm:$0xf]  ;;  %v510_v48 = vld [vmem:[#allocation5 + $0x4] sm:$0xf]  ;;  %vm205_vm0 = vcmask 785408   ;;  %v352_v34 = vstv %s708_s6 }
  0x1a   :  { %213 = vmatpush.bf16.msra.mxu0 %v442_v24  ;;  %v515_v42 = vld [vmem:[#allocation5 + $0x28] sm:$0xf0]  ;;  %329 = vmatpush.bf16.msra.mxu3 %v535_v41  ;;  %v407_v49 = vld [vmem:[#allocation5 + $0xc] sm:$0xf0]  ;;  %v413_v50 = vld [vmem:[#allocation5 + $0x8] sm:$0xf] }
  0x1b   :  { %226 = vmatpush.bf16.msra.mxu1 %v446_v25  ;;  %v426_v45 = vor.u32 %v515_v42, %v425_v40  ;;  %v511_v47 = vld [vmem:[#allocation5 + $0x8] sm:$0xf0]  ;;  %v512_v51 = vld [vmem:[#allocation5 + $0x10] sm:$0xf0]  ;;  %v75_v53 = vld [vmem:[#allocation3] sm:$0xff]  ;;  %v410_v54 = vor.u32 %v510_v48, %v407_v49  ;;  %vm358_vm1 = vcmask 7168  }
  0x1c   :  { %239 = vmatpush.bf16.msra.mxu2 %v450_v26  ;;  %v406_v52 = vor.u32 %v511_v47, %v405_v46  ;;  %v414_v55 = vor.u32 %v512_v51, %v413_v50  ;;  %v76_v56 = vpack.c.bf16 %v75_v53, %v75_v53  ;;  %v534_v57 = vld [vmem:[#allocation7 + $0x30] sm:$0xff]  ;;  %v533_v58 = vld [vmem:[#allocation7 + $0x28] sm:$0xff]  ;;  %v532_v59 = vld [vmem:[#allocation7 + $0x20] sm:$0xff] }
  0x1d   :  { %v531_v60 = vld [vmem:[#allocation7 + $0x18] sm:$0xff]  ;;  %v530_v61 = vld [vmem:[#allocation7 + $0x10] sm:$0xff]  ;;  %v529_v62 = vld [vmem:[#allocation7 + $0x8] sm:$0xff] }
  0x1e   :  { %214 = vmatpush.bf16.msra.mxu0 %v430_v33  ;;  %330 = vmatpush.bf16.msra.mxu3 %v534_v57  ;;  %v528_v63 = vld [vmem:[#allocation7] sm:$0xff]  ;;  %v101_v0 = vld [vmem:[%s704_s2] sm:$0x7] }
  0x1f   :  { %227 = vmatpush.bf16.msra.mxu1 %v434_v37  ;;  %v103_v1 = vperm.slane %v101_v0, 0  ;;  %v104_v2 = vperm.slane %v101_v0, 1  ;;  %v105_v8 = vperm.slane %v101_v0, 2  ;;  %v543_v26 = vld [vmem:[%s706_s4] ss:$0 sm:$0xff] }
  0x20   :  { %240 = vmatpush.bf16.msra.mxu2 %v438_v38  ;;  %v544_v30 = vld [vmem:[%s707_s5] ss:$0 sm:$0xff] }
  0x22   :  { %215 = vmatpush.bf16.msra.mxu0 %v418_v43  ;;  %331 = vmatpush.bf16.msra.mxu3 %v533_v58 }
  0x23   :  { %228 = vmatpush.bf16.msra.mxu1 %v422_v44 }
  0x24   :  { %241 = vmatpush.bf16.msra.mxu2 %v426_v45 }
  0x26   :  { %216 = vmatpush.bf16.msra.mxu0 %v406_v52  ;;  %332 = vmatpush.bf16.msra.mxu3 %v532_v59 }
  0x27   :  { %229 = vmatpush.bf16.msra.mxu1 %v410_v54 }
  0x28   :  { %242 = vmatpush.bf16.msra.mxu2 %v414_v55 }
  0x29   :  { %475 = vmatmul.msk.bf16.vlgmr.msra.gmra.mxu0 %vm205_vm0, %v76_v56 }
  0x2a   :  { %476 = vmatmul.msk.bf16.vlgmr.msra.gmra.mxu1 %vm205_vm0, %v76_v56  ;;  %333 = vmatpush.bf16.msra.mxu3 %v531_v60 }
  0x2b   :  { %477 = vmatmul.msk.bf16.vlgmr.msra.gmra.mxu2 %vm205_vm0, %v76_v56 }
  0x2e   :  { %334 = vmatpush.bf16.msra.mxu3 %v530_v61 }
  0x32   :  { %335 = vmatpush.bf16.msra.mxu3 %v529_v62 }
  0x36   :  { %336 = vmatpush.bf16.msra.mxu3 %v528_v63 }
  0xa6   :  { %v218_v3 = vpop.f32.mrf.mxu0 }
  0xa7   :  { %v219_v4 = vadd.f32 %v218_v3, %v103_v1  ;;  %v231_v5 = vpop.f32.mrf.mxu1 }
  0xa8   :  { %v232_v7 = vadd.f32 %v231_v5, %v104_v2 }
  0xa9   :  { %v248_v6 = vmul.f32 0.5, %v219_v4 }
  0xab   :  { %545 = vtanh.f32 %v248_v6 }
  0xac   :  { %547 = vtanh.f32 %v232_v7 }
  0xae   :  { %v244_v9 = vpop.f32.mrf.mxu2  ;;  %v220_v11 = vpop.f32.mrf.mxu0 }
  0xaf   :  { %v245_v10 = vadd.f32 %v244_v9, %v105_v8  ;;  %v233_v12 = vpop.f32.mrf.mxu1 }
  0xb1   :  { %v252_v13 = vmul.f32 0.5, %v245_v10  ;;  %v546_v14 = vpop.eup %545 }
  0xb2   :  { %v250_v15 = vadd.f32 1.0, %v546_v14  ;;  %v548_v16 = vpop.eup %547 }
  0xb3   :  { %549 = vtanh.f32 %v252_v13 }
  0xb4   :  { %v251_v17 = vmul.f32 0.5, %v250_v15 }
  0xb6   :  { %v246_v18 = vpop.f32.mrf.mxu2  ;;  %v257_v19 = vmul.f32 %v548_v16, %v251_v17 }
  0xb8   :  { %551 = vtanh.f32 %v257_v19 }
  0xb9   :  { %v550_v20 = vpop.eup %549 }
  0xba   :  { %v254_v21 = vadd.f32 1.0, %v550_v20 }
  0xbc   :  { %v255_v22 = vmul.f32 0.5, %v254_v21 }
  0xbe   :  { %v552_v23 = vpop.eup %551 }
  0xbf   :  { %v259_v24 = vmul.f32 %v552_v23, %v255_v22 }
  0xc1   :  { %v260_v25 = vpack.c.bf16 %v259_v24, %v259_v24 }
  0xc3   :  { %337 = vmatmul.bf16.vlgmr.msra.gmra.mxu3 %v260_v25 }
 0x146   :  { %v338_v27 = vpop.f32.mrf.mxu3 }
 0x147   :  { %v339_v28 = vadd.f32 %v543_v26, %v338_v27 }
 0x149   :  { %v342_v29 = vmul.f32 0.1, %v339_v28 }
 0x14b   :  { %v343_v31 = vmax.f32 %v339_v28, %v342_v29 }
 0x14d   :  { %v348_v32 = vmul.f32 %v544_v30, %v343_v31 }
 0x14e   :  { %v340_v33 = vpop.f32.mrf.mxu3 }
 0x14f   :  { %349 = vadd.xlane.f32.xlu0 %v348_v32 }
 0x1c2   :  { %v350_v35 = vpop.xlane.xlu0 %349 }
 0x1c3   :  { %v353_v36 = vadd.f32 %v352_v34, %v350_v35 }
 0x1c5   :  { %v354_v37 = vmul.f32 0.5, %v353_v36 }
 0x1c7   :  { %553 = vtanh.f32 %v354_v37 }
 0x1cd   :  { %v554_v38 = vpop.eup %553 }
 0x1ce   :  { %v356_v39 = vadd.f32 1.0, %v554_v38 }
 0x1d0   :  { %v357_v40 = vmul.f32 0.5, %v356_v39 }
 0x1d2   :  { %359 = vst.msk [vmem:[#allocation8] sm:$0xff] %vm358_vm1, %v357_v40 }
 0x1d9   :  { %v378_v41 = vld [vmem:[#allocation8] sm:$0xf] }
 0x1da   :  { %379 = vst [vmem:[%s709_s7] sm:$0xf] %v378_v41 }
 0x1db   :  { %397 = vsyncpa [#allocation4], 1 }
 0x1dc   :  { %398 = vsyncpa [#allocation6], 1 }

</bundles_post_ra>
